<compile_context>
chip_gen: v7x
topology: tpu7x:2x2x1
jax: 0.10.0
libtpu: 0.0.40
codegen_flags: <defaults>
</compile_context>

<pallas_src>
import functools

import jax
import jax.numpy as jnp
from jax.experimental import pallas as pl
from jax.experimental.pallas import tpu as pltpu


def _sublane_pack(itemsize):
    # sublane packing: f32 -> 8, bf16 -> 16, int8/fp8 -> 32
    return {4: 8, 2: 16, 1: 32}.get(itemsize, 8)


def _vmem_plan():
    """Generation-aware (vmem_limit_bytes, tile_budget_bytes).

    v5e/v6e: 128 MiB physical -> 64 MiB limit, ~40 MiB tile budget.
    v7x    :  64 MiB physical -> 32 MiB limit, ~20 MiB tile budget.
    """
    phys = 64 * 1024 * 1024  # conservative default (v7x per-TC)
    try:
        info = pltpu.get_tpu_info()
        phys = int(getattr(info, "vmem_capacity_bytes", phys))
    except Exception:
        pass
    limit = min(phys // 2, 64 * 1024 * 1024)
    budget = (limit * 5) // 8
    return int(limit), int(budget)


def _pick_row_tile(n, c, x_itemsize, t_itemsize, vmem_budget_bytes):
    """Largest legal row tile that fits the VMEM budget.

    Budget model (per row): lane-padded C for 2 pipeline buffers per input
    plus ~4 live f32 (tn, c_pad) compute temporaries, plus ~6 lane-padded
    (tn, 128) f32 keepdims temporaries (m, lse, z, sum_w, sum_xw, loss).
    """
    pack = max(_sublane_pack(x_itemsize), _sublane_pack(t_itemsize))
    if n <= pack:
        return int(n)  # block row-dim == full dim -> always a legal BlockSpec

    c_pad = pl.cdiv(c, 128) * 128
    bytes_per_row = (c_pad * (2 * x_itemsize + 2 * t_itemsize + 4 * 4)
                     + 6 * 128 * 4)
    tn = max(1, vmem_budget_bytes // bytes_per_row)

    n_up = pl.cdiv(n, pack) * pack
    # Ensure >= 2 grid steps when the shape allows it, so v7x's two
    # TensorCores both get work (negligible cost on single-TC chips).
    two_way = max(pack, pl.cdiv(pl.cdiv(n, 2), pack) * pack)

    tn = min(tn, n_up, two_way)
    tn = max(pack, (tn // pack) * pack)  # multiple of sublane packing
    return int(tn)


def _nll_smooth_kernel(x_ref, t_ref, out_ref, *, confidence, smoothing,
                       n_rows, num_classes):
    """Per-block partial sum of the label-smoothed multi-label NLL loss."""
    i = pl.program_id(0)
    tn = x_ref.shape[0]

    x = x_ref[...].astype(jnp.float32)       # (tn, C) - f32 math (v5e-safe)
    t = t_ref[...].astype(jnp.float32)       # (tn, C)

    # Row-wise logsumexp (stable); logprobs never materialized:
    #   -logprob_c = z - x_c,  z = m + lse
    m = jnp.max(x, axis=-1, keepdims=True)                           # (tn, 1)
    lse = jnp.log(jnp.sum(jnp.exp(x - m), axis=-1, keepdims=True))   # (tn, 1)
    z = m + lse                                                      # (tn, 1)

    # Folded target weights:  w = conf*t + smoothing/C
    #   loss_row = conf*sum((z-x)*t) + smoothing*mean(z-x)
    #            = sum(w)*z - sum(x*w)
    w = confidence * t + (smoothing / num_classes)                   # (tn, C)
    sum_w = jnp.sum(w, axis=-1, keepdims=True)                       # (tn, 1)
    sum_xw = jnp.sum(x * w, axis=-1, keepdims=True)                  # (tn, 1)
    loss = sum_w * z - sum_xw                                        # (tn, 1)

    # Mask rows of the (possibly partial) last block.  Must stay a SELECT:
    # out-of-bounds rows hold unspecified data and may be Inf/NaN.
    row_ids = i * tn + jax.lax.broadcasted_iota(jnp.int32, (tn, 1), 0)
    loss = jnp.where(row_ids < n_rows, loss, 0.0)

    total = jnp.sum(loss)

    # Lane-dense (1,8,128) partial block with the scalar at [0,0,0] only,
    # so the wrapper can do a flat jnp.sum over all partials.
    pos = ((jax.lax.broadcasted_iota(jnp.int32, (1, 8, 128), 1) == 0)
           & (jax.lax.broadcasted_iota(jnp.int32, (1, 8, 128), 2) == 0))
    out_ref[...] = jnp.where(pos, total, 0.0).astype(jnp.float32)


def nll_multilabel_smooth(x, target, smoothing=0.1):
    """Training-mode forward of NLLMultiLabelSmooth. Returns a scalar f32.

    x, target: same shape; softmax / reductions over the last axis.
    """
    confidence = 1.0 - smoothing
    c = x.shape[-1]

    # Stream in native dtype (bf16 stays bf16 in HBM); cast happens in-kernel.
    x2 = jnp.reshape(x, (-1, c))
    t2 = jnp.reshape(target, (-1, c))
    n = x2.shape[0]

    # TODO(synk): for vocab-sized C (>= ~32k classes) the class axis should be
    # tiled with a second grid dimension and a streaming logsumexp; currently a
    # whole row must fit in one block.
    vmem_limit, vmem_budget = _vmem_plan()
    tn = _pick_row_tile(n, c, x2.dtype.itemsize, t2.dtype.itemsize,
                        vmem_budget)
    num_blocks = pl.cdiv(n, tn)

    kernel = functools.partial(
        _nll_smooth_kernel, confidence=confidence, smoothing=smoothing,
        n_rows=n, num_classes=float(c))

    partials = pl.pallas_call(
        kernel,
        out_shape=jax.ShapeDtypeStruct((num_blocks, 8, 128), jnp.float32),
        grid_spec=pltpu.PrefetchScalarGridSpec(
            num_scalar_prefetch=0,
            grid=(num_blocks,),
            in_specs=[
                pl.BlockSpec((tn, c), lambda i: (i, 0)),
                pl.BlockSpec((tn, c), lambda i: (i, 0)),
            ],
            out_specs=pl.BlockSpec((1, 8, 128), lambda i: (i, 0, 0)),
        ),
        compiler_params=pltpu.CompilerParams(
            dimension_semantics=("parallel",),   # megacore-shardable
            vmem_limit_bytes=vmem_limit,         # generation-aware
        ),
    )(x2, t2)

    # Tiny final reduction over per-block partials; mean over true row count.
    return jnp.sum(partials) / jnp.float32(n)


def _reference(x, target, smoothing=0.1):
    # Pure-JAX reference of the PyTorch training-mode forward.
    confidence = 1.0 - smoothing
    x = x.astype(jnp.float32)
    target = target.astype(jnp.float32)
    logprobs = jax.nn.log_softmax(x, axis=-1)
    nll_loss = jnp.sum(-logprobs * target, axis=-1)
    smooth_loss = jnp.mean(-logprobs, axis=-1)
    loss = confidence * nll_loss + smoothing * smooth_loss
    return jnp.mean(loss)


if __name__ == "__main__":
    key = jax.random.PRNGKey(0)
    kx, kt, kx2, kt2 = jax.random.split(key, 4)

    # Case 1: f32, batch=2, seq=7, classes=32 -> 14 rows; NOT a multiple of
    # the row tile so the unpadded partial-last-block + row-mask path runs.
    B, S, C = 2, 7, 32
    x = jax.random.normal(kx, (B, S, C), dtype=jnp.float32)
    raw = jax.random.uniform(kt, (B, S, C), dtype=jnp.float32)
    target = raw / jnp.sum(raw, axis=-1, keepdims=True)   # soft multi-labels

    out = nll_multilabel_smooth(x, target, smoothing=0.1)
    out = jax.block_until_ready(out)
    ref = _reference(x, target, smoothing=0.1)
    assert jnp.allclose(out, ref, atol=1e-5, rtol=1e-5), (out, ref)

    # Case 2: bf16 inputs (native-dtype streaming, sublane pack 16),
    # batch=3, seq=11, classes=160 -> 33 rows, two blocks, partial last block.
    B2, S2, C2 = 3, 11, 160
    xb = jax.random.normal(kx2, (B2, S2, C2), dtype=jnp.float32)
    rawb = jax.random.uniform(kt2, (B2, S2, C2), dtype=jnp.float32)
    tb = rawb / jnp.sum(rawb, axis=-1, keepdims=True)
    xb16 = xb.astype(jnp.bfloat16)
    tb16 = tb.astype(jnp.bfloat16)

    out2 = nll_multilabel_smooth(xb16, tb16, smoothing=0.1)
    out2 = jax.block_until_ready(out2)
    ref2 = _reference(xb16, tb16, smoothing=0.1)
    assert jnp.allclose(out2, ref2, atol=1e-3, rtol=1e-3), (out2, ref2)

    # TODO(synk): eval-mode branch (F.cross_entropy with integer class targets)
    # is not implemented; the module defaults to training mode.
    print("KERNEL_OK")
</pallas_src>

<mosaic_0001>
module attributes {stable_mosaic.version = 11 : i64} {
  func.func @_nll_smooth_kernel(%arg0: i32, %arg1: memref<8x32xf32, #tpu.memory_space<vmem>>, %arg2: memref<8x32xf32, #tpu.memory_space<vmem>>, %arg3: memref<1x8x128xf32, #tpu.memory_space<vmem>>) attributes {dimension_semantics = [#tpu.dimension_semantics<parallel>], iteration_bounds = array<i64: 2>, scalar_prefetch = 0 : i64, scratch_operands = 0 : i64, tpu.core_type = #tpu.core_type<tc>, window_params = [{transform_indices = @transform_0, window_bounds = array<i64: 8, 32>}, {transform_indices = @transform_1, window_bounds = array<i64: 8, 32>}, {transform_indices = @transform_2, window_bounds = array<i64: 1, 8, 128>}]} {
    %c0 = arith.constant 0 : index
    %c0_0 = arith.constant 0 : index
    %0 = vector.load %arg1[%c0, %c0_0] : memref<8x32xf32, #tpu.memory_space<vmem>>, vector<8x32xf32>
    %c0_1 = arith.constant 0 : index
    %c0_2 = arith.constant 0 : index
    %1 = vector.load %arg2[%c0_1, %c0_2] : memref<8x32xf32, #tpu.memory_space<vmem>>, vector<8x32xf32>
    %cst = arith.constant dense<0xFF800000> : vector<8xf32>
    %2 = vector.multi_reduction <maximumf>, %0, %cst [1] : vector<8x32xf32> to vector<8xf32>
    %3 = vector.shape_cast %2 : vector<8xf32> to vector<8x1xf32>
    %4 = vector.broadcast %3 : vector<8x1xf32> to vector<8x32xf32>
    %5 = arith.subf %0, %4 : vector<8x32xf32>
    %6 = math.exp %5 : vector<8x32xf32>
    %cst_3 = arith.constant dense<0.000000e+00> : vector<8xf32>
    %7 = vector.multi_reduction <add>, %6, %cst_3 [1] : vector<8x32xf32> to vector<8xf32>
    %8 = vector.shape_cast %7 : vector<8xf32> to vector<8x1xf32>
    %9 = math.log %8 : vector<8x1xf32>
    %10 = arith.addf %3, %9 : vector<8x1xf32>
    %cst_4 = arith.constant 0.899999976 : f32
    %11 = vector.broadcast %cst_4 : f32 to vector<8x32xf32>
    %12 = arith.mulf %11, %1 : vector<8x32xf32>
    %cst_5 = arith.constant 3.125000e-03 : f32
    %13 = vector.broadcast %cst_5 : f32 to vector<8x32xf32>
    %14 = arith.addf %12, %13 : vector<8x32xf32>
    %cst_6 = arith.constant dense<0.000000e+00> : vector<8xf32>
    %15 = vector.multi_reduction <add>, %14, %cst_6 [1] : vector<8x32xf32> to vector<8xf32>
    %16 = vector.shape_cast %15 : vector<8xf32> to vector<8x1xf32>
    %17 = arith.mulf %0, %14 : vector<8x32xf32>
    %cst_7 = arith.constant dense<0.000000e+00> : vector<8xf32>
    %18 = vector.multi_reduction <add>, %17, %cst_7 [1] : vector<8x32xf32> to vector<8xf32>
    %19 = vector.shape_cast %18 : vector<8xf32> to vector<8x1xf32>
    %20 = arith.mulf %16, %10 : vector<8x1xf32>
    %21 = arith.subf %20, %19 : vector<8x1xf32>
    %c8_i32 = arith.constant 8 : i32
    %22 = arith.muli %arg0, %c8_i32 : i32
    %23 = tpu.iota {dimensions = array<i32: 0>} : vector<8x1xi32>
    %24 = vector.broadcast %22 : i32 to vector<8x1xi32>
    %25 = arith.addi %24, %23 : vector<8x1xi32>
    %c14_i32 = arith.constant 14 : i32
    %26 = vector.broadcast %c14_i32 : i32 to vector<8x1xi32>
    %27 = arith.cmpi slt, %25, %26 : vector<8x1xi32>
    %cst_8 = arith.constant 0.000000e+00 : f32
    %28 = vector.broadcast %cst_8 : f32 to vector<8x1xf32>
    %29 = arith.select %27, %21, %28 : vector<8x1xi1>, vector<8x1xf32>
    %30 = vector.shape_cast %29 : vector<8x1xf32> to vector<1x8x1xf32>
    %cst_9 = arith.constant dense<0.000000e+00> : vector<1xf32>
    %31 = vector.multi_reduction <add>, %30, %cst_9 [1, 2] : vector<1x8x1xf32> to vector<1xf32>
    %32 = vector.shape_cast %31 : vector<1xf32> to vector<1x1x1xf32>
    %33 = vector.extract %32[0, 0, 0] : f32 from vector<1x1x1xf32>
    %34 = tpu.iota {dimensions = array<i32: 1>} : vector<1x8x128xi32>
    %c0_i32 = arith.constant 0 : i32
    %35 = vector.broadcast %c0_i32 : i32 to vector<1x8x128xi32>
    %36 = arith.cmpi eq, %34, %35 : vector<1x8x128xi32>
    %37 = tpu.iota {dimensions = array<i32: 2>} : vector<1x8x128xi32>
    %c0_i32_10 = arith.constant 0 : i32
    %38 = vector.broadcast %c0_i32_10 : i32 to vector<1x8x128xi32>
    %39 = arith.cmpi eq, %37, %38 : vector<1x8x128xi32>
    %40 = arith.andi %36, %39 : vector<1x8x128xi1>
    %cst_11 = arith.constant 0.000000e+00 : f32
    %41 = vector.broadcast %33 : f32 to vector<1x8x128xf32>
    %42 = vector.broadcast %cst_11 : f32 to vector<1x8x128xf32>
    %43 = arith.select %40, %41, %42 : vector<1x8x128xi1>, vector<1x8x128xf32>
    %c0_12 = arith.constant 0 : index
    %c0_13 = arith.constant 0 : index
    %c0_14 = arith.constant 0 : index
    %44 = vector.load %arg3[%c0_12, %c0_13, %c0_14] : memref<1x8x128xf32, #tpu.memory_space<vmem>>, vector<1x8x128xf32>
    tpu.vector_store %arg3[%c0_12, %c0_13, %c0_14], %43 {strides = array<i32>} : memref<1x8x128xf32, #tpu.memory_space<vmem>>, vector<1x8x128xf32>,
    return
  }
  func.func @transform_0(%arg0: i32) -> (i32, i32) {
    %c0_i32 = arith.constant 0 : i32
    %c0_i32_0 = arith.constant 0 : i32
    return %arg0, %c0_i32 : i32, i32
  }
  func.func @transform_1(%arg0: i32) -> (i32, i32) {
    %c0_i32 = arith.constant 0 : i32
    %c0_i32_0 = arith.constant 0 : i32
    return %arg0, %c0_i32 : i32, i32
  }
  func.func @transform_2(%arg0: i32) -> (i32, i32, i32) {
    %c0_i32 = arith.constant 0 : i32
    %c0_i32_0 = arith.constant 0 : i32
    %c0_i32_1 = arith.constant 0 : i32
    return %arg0, %c0_i32, %c0_i32_0 : i32, i32, i32
  }
}

</mosaic_0001>

<bundles_post_ra>
// kernel: tpu_custom_call.1
= control target key start
LH: loop header
LB: loop body
LE: loop exit
PB: predicated region body
PF: predicated region fallthrough
CT: control target
= control target key end

     0   :  { %7 = vsyncpa [#allocation3], 0  ;;  %s797_s0 = inlined_call_operand.hbm [shape: f32[14,32], index: 0, kind: input, shape index: {}]   ;;  %s798_s1 = inlined_call_operand.hbm [shape: f32[14,32], index: 1, kind: input, shape index: {}]   ;;  %s799_s2 = inlined_call_operand.hbm [shape: f32[2,8,128], index: 2, kind: output, shape index: {}]  }
   0x1   :  { %9 = vsyncpa [#allocation3 + $0x1], 0 }
   0x2   :  { %10 = vsyncpa [#allocation6], 0 }
   0x3   :  { %12 = vsyncpa [#allocation6 + $0x1], 0 }
   0x4   :  { %13 = vsyncpa [#allocation4], 0 }
   0x5   :  { %15 = vsyncpa [#allocation4 + $0x1], 0  ;;  %s578_s9 = smov 0   ;;  %s580_s10 = smov 0  }
   0x6   :  { %s582_s11 = smov 0   ;;  %s584_s12 = smov 0  }
   0x7 LB: > { %s599_s13 = sadd.s32 4294967295, %s558_s12   ;;  %s355_s14 = sadd.s32 4294967294, %s558_s12   ;;  %s558_s12 = sphi %s584_s12, %s818_s12   ;;  %s554_s11 = sphi %s582_s11, %s817_s11   ;;  %s550_s10 = sphi %s580_s10, %s816_s10   ;;  %s546_s9 = sphi %s578_s9, %s815_s9  }
   0x8   : > { %s603_s15 = sadd.s32 1, %s558_s12   ;;  %s28_s16 = sadd.s32 1, %s554_s11 }
   0x9   : > { %s25_s17 = ssub.s32 %s558_s12, %s603_s15  ;;  %p35_p0 = scmp.ne.s32.totalorder %s554_s11, %s550_s10 }
   0xa   : > { %p26_p1 = scmp.eq.s32.totalorder %s25_s17, 0  ;;  %p36_p2 = scmp.eq.s32.totalorder %s558_s12, 0 }
   0xb   : > { %p41_p3 = scmp.ne.s32.totalorder %s550_s10, %s546_s9  ;;  %p42_p4 = scmp.eq.s32.totalorder %s599_s13, 0 }
   0xc   : > { %s615_s18 = scalar_select %p26_p1, %s554_s11, %s28_s16  }
   0xd   : > { %p617_p5 = por %p36_p2, %p35_p0  ;;  %p621_p6 = por %p42_p4, %p41_p3 }
   0xe   : > { %p91_p7 = scmp.eq.s32.totalorder %s599_s13, 1  ;;  %p97_p8 = scmp.eq.s32.totalorder %s355_s14, 1 }
   0xf   : > { %s803_s20 = scalar_select %p621_p6, 1, 0 }
  0x10   : > { %p390_p10 = scmp.lt.s32.totalorder %s558_s12, 2  ;;  %p628_p11 = por %p91_p7, %p35_p0 }
  0x11   : > { %p632_p12 = por %p97_p8, %p41_p3  ;;  %s637_s23 = sand.u32 1, %s554_s11  }
  0x12   : > { %s804_s21 = scalar_select %p628_p11, 1, 0 }
  0x13   : > { %s805_s22 = scalar_select %p632_p12, 1, 0 }
  0x14   : > { %s359_s24 = sshll.u32 %s558_s12, 7  ;;  %s358_s25 = sshll.u32 %s637_s23, 3 }
  0x15   : > { %s646_s28 = scalar_lea.hbm %s797_s0, %s359_s24  ;;  %s121_s29 = scalar_lea.vmem [#allocation2], %s358_s25 }
  0x16   : > { %s128_s30 = sshll.u32 %s121_s29, 4  ;;  %p652_p13 = pnand %p390_p10, %p617_p5  ;;  %s656_s30 = int_to_ptr.vmem [resolvable:$true] %s128_s30 }
  0x17   : > { %s118_s4 = scalar_lea.sflag [#allocation3], %s637_s23  ;;  %s428_s5 = scalar_lea.hbm %s646_s28, 128 }
  0x18   : > { %p429_p2 = scmp.ne.s32.totalorder %s646_s28, %s428_s5  ;;  %p430_p3 = pneg %p652_p13 }
  0x19   : > { %s433_s8 = scalar_lea.hbm %s797_s0, 256  ;;  %p434_p5 = scmp.lt.u32.totalorder %s646_s28, %s797_s0 }
  0x1a   : > { %p431_p4 = pnand %p430_p3, %p429_p2  ;;  %p435_p8 = scmp.lt.u32.totalorder %s433_s8, %s428_s5 }
  0x1b   : > { %p437_p9 = scmp.lt.u32.totalorder %s428_s5, %s646_s28 }
  0x1c   : > { %p432_p7 = pneg %p431_p4  ;;  %p436_p10 = por %p435_p8, %p434_p5 }
  0x1e   : > { %p438_p0 = por %p437_p9, %p436_p10 }
  0x20   : > { %p439_p1 = pnand %p438_p0, %p432_p7 }
  0x22   : > { %442 = shalt.err (!%p439_p1)
}
  0x23   : > { %s443_s17 = scalar_lea.vmem %s656_s30, 128  ;;  %s560_s19 = smov [#allocation2]  }
  0x24   : > { %p444_p2 = scmp.ne.s32.totalorder %s656_s30, %s443_s17  ;;  %s448_s26 = sshll.u32 %s560_s19, 4  ;;  %s449_s26 = int_to_ptr.vmem [resolvable:$false] %s448_s26 }
  0x25   : > { %s450_s27 = scalar_lea.vmem %s449_s26, 256  ;;  %p451_p11 = scmp.lt.s32.totalorder %s656_s30, %s449_s26 }
  0x26   : > { %p446_p4 = pnand %p444_p2, %p430_p3  ;;  %p452_p5 = scmp.lt.s32.totalorder %s450_s27, %s443_s17 }
  0x28   : > { %p447_p12 = pneg %p446_p4  ;;  %p453_p8 = por %p452_p5, %p451_p11 }
  0x2a   : > { %p454_p9 = pnand %p453_p8, %p447_p12 }
  0x2c   : > { %457 = shalt.err (!%p454_p9)
}
  0x2d   : > { %382 = dma.hbm_to_vmem [thread:$0]  (!%p652_p13), %s646_s28, 128, %s656_s30, %s118_s4  }
  0x2e   : > { %p807_p0 = scmp.lt.s32.totalorder %s558_s12, 3  ;;  %p808_p1 = scmp.ge.s32.totalorder %s558_s12, 1 }
  0x2f   : > { %s699_s7 = scalar_lea.hbm %s798_s1, %s359_s24  ;;  %s139_s8 = scalar_lea.vmem [#allocation5], %s358_s25 }
  0x30   : > { %p690_p7 = pnand %p808_p1, %p807_p0  ;;  %s146_s14 = sshll.u32 %s139_s8, 4  ;;  %s147_s14 = int_to_ptr.vmem [resolvable:$true] %s146_s14 }
  0x31   : > { %s136_s28 = scalar_lea.sflag [#allocation6], %s637_s23  ;;  %s458_s30 = scalar_lea.hbm %s699_s7, 128 }
  0x32   : > { %s809_s29 = scalar_select %p690_p7, 1, 0 }
  0x33   : > { %p459_p11 = scmp.ne.s32.totalorder %s699_s7, %s458_s30  ;;  %s463_s24 = scalar_lea.hbm %s798_s1, 256 }
  0x34   : > { %p464_p2 = scmp.lt.u32.totalorder %s699_s7, %s798_s1  ;;  %p465_p4 = scmp.lt.u32.totalorder %s463_s24, %s458_s30 }
  0x35   : > { %p461_p12 = pnand %p459_p11, %p430_p3  ;;  %p467_p8 = scmp.lt.u32.totalorder %s458_s30, %s699_s7 }
  0x36   : > { %p466_p5 = por %p465_p4, %p464_p2 }
  0x37   : > { %p462_p10 = pneg %p461_p12 }
  0x38   : > { %p468_p9 = por %p467_p8, %p466_p5 }
  0x3a   : > { %p469_p0 = pnand %p468_p9, %p462_p10 }
  0x3c   : > { %472 = shalt.err (!%p469_p0)
}
  0x3d   : > { %s473_s23 = scalar_lea.vmem %s147_s14, 128  ;;  %s561_s25 = smov [#allocation5]  }
  0x3e   : > { %p474_p1 = scmp.ne.s32.totalorder %s147_s14, %s473_s23  ;;  %s478_s26 = sshll.u32 %s561_s25, 4  ;;  %s479_s26 = int_to_ptr.vmem [resolvable:$false] %s478_s26 }
  0x3f   : > { %s480_s27 = scalar_lea.vmem %s479_s26, 256  ;;  %p481_p6 = scmp.lt.s32.totalorder %s147_s14, %s479_s26 }
  0x40   : > { %p476_p11 = pnand %p474_p1, %p430_p3  ;;  %p482_p7 = scmp.lt.s32.totalorder %s480_s27, %s473_s23 }
  0x42   : > { %p477_p12 = pneg %p476_p11  ;;  %p483_p2 = por %p482_p7, %p481_p6 }
  0x44   : > { %p484_p4 = pnand %p483_p2, %p477_p12 }
  0x46   : > { %487 = shalt.err (!%p484_p4)
}
  0x47   : > { %385 = dma.hbm_to_vmem [thread:$0]  (!%p652_p13), %s699_s7, 128, %s147_s14, %s136_s28  }
  0x48   : > { %p810_p10 = scmp.ne.s32.totalorder %s809_s29, 0 }
  0x49   : > { %s726_s5 = sand.u32 (!%p810_p10), 1, %s550_s10   ;;  %p811_p6 = scmp.ne.s32.totalorder (!%p810_p10), %s803_s20, 0 }
  0x4a   : > { %155 = sbr.rel (%p810_p10) target bundleno = 627 (0x273), region = 28  ;;  %s729_s6 = sshll.u32 (!%p810_p10), %s726_s5, 3 }
  0x4b   : > { %s158_s8 = scalar_lea.sflag (!%p810_p10), [#allocation3], %s726_s5  ;;  %s161_s30 = scalar_lea.vmem (!%p810_p10), [#allocation2], %s729_s6 }
  0x51   : > { %533 = dma.done.wait (%p811_p6), %s158_s8, 128  }
  0x52   : > { %535 = vsyncadd (%p811_p6), %s158_s8, 4294967168  ;;  %s167_s3 = scalar_lea.sflag [#allocation6], %s726_s5  ;;  %s170_s29 = scalar_lea.vmem [#allocation5], %s729_s6 }
  0x53   : > { %537 = dma.done.wait (%p811_p6), %s167_s3, 128  }
  0x54   : > { %539 = vsyncadd (%p811_p6), %s167_s3, 4294967168  ;;  %vm198_vm0 = vcmask 261120   ;;  %v196_v0 = vld [vmem:[%s161_s30] sm:$0xff]  ;;  %v197_v2 = vld [vmem:[%s170_s29] sm:$0xff]  ;;  %v223_v14 = vlaneseq  ;;  %s366_s20 = sshll.u32 %s599_s13, 3  ;;  %vm229_vm2 = vcmask 7168  }
  0x55   : > { %v199_v1 = vsel %vm198_vm0, %v196_v0, -inf  ;;  %v211_v3 = vmul.f32 0.9, %v197_v2  ;;  %v225_v17 = vstv %s366_s20  ;;  %s368_s7 = sshll.u32 %s599_s13, 7  ;;  %s195_s14 = scalar_lea.vmem [#allocation7], %s729_s6 }
  0x56   : > { %200 = vmax.xlane.f32.xlu0 %v199_v1  ;;  %v224_v16 = vshrl.u32 %v223_v14, 7  ;;  %v242_v34 = vand.u32 127, %v223_v14  ;;  %s262_s28 = sshll.u32 %s195_s14, 4  ;;  %s753_s17 = scalar_lea.hbm %s799_s2, %s368_s7  ;;  %s755_s28 = int_to_ptr.vmem [resolvable:$true] %s262_s28 }
  0x57   : > { %v212_v4 = vadd.f32 0.003125, %v211_v3  ;;  %s249_s19 = scalar_lea.sflag [#allocation4], %s726_s5  ;;  %s488_s23 = scalar_lea.vmem %s755_s28, 128 }
  0x58   : > { %v226_v20 = vadd.s32 %v225_v17, %v224_v16  ;;  %vm240_vm3 = vcmp.eq.s32.totalorder %v224_v16, 0  ;;  %vm243_vm4 = vcmp.eq.s32.totalorder %v242_v34, 0  ;;  %p489_p13 = scmp.ne.s32.totalorder %s755_s28, %s488_s23  ;;  %p812_p3 = scmp.ne.s32.totalorder %s804_s21, 0 }
  0x59   : > { %v213_v5 = vsel %vm198_vm0, %v212_v4, 0.0  ;;  %v216_v6 = vmul.f32 %v212_v4, %v196_v0  ;;  %vm244_vm5 = vmand %vm240_vm3, %vm243_vm4  ;;  %s562_s13 = smov [#allocation7]  }
  0x5a   : > { %214 = vadd.xlane.f32.xlu1 %v213_v5  ;;  %vm227_vm1 = vcmp.lt.s32.totalorder %v226_v20, 14  ;;  %p490_p7 = pnand %p489_p13, %p812_p3  ;;  %s492_s25 = sshll.u32 %s562_s13, 4  ;;  %s493_s25 = int_to_ptr.vmem [resolvable:$false] %s492_s25 }
  0x5b   : > { %v217_v7 = vsel %vm198_vm0, %v216_v6, 0.0  ;;  %s494_s26 = scalar_lea.vmem %s493_s25, 256  ;;  %p495_p8 = scmp.lt.s32.totalorder %s755_s28, %s493_s25 }
  0x5c   : > { %p491_p5 = pneg %p490_p7  ;;  %p496_p9 = scmp.lt.s32.totalorder %s494_s26, %s488_s23 }
  0x5e   : > { %218 = vadd.xlane.f32.xlu1 %v217_v7  ;;  %p497_p0 = por %p496_p9, %p495_p8 }
  0x60   : > { %p498_p1 = pnand %p497_p0, %p491_p5 }
  0xe3   : > { %v201_v8 = vpop.xlane.xlu0 %200 }
  0xe4   : > { %v202_v9 = vsub.f32 %v196_v0, %v201_v8 }
  0xe6   : > { %v203_v10 = vmul.f32 1.442695, %v202_v9 }
  0xe7   : > { %v215_v15 = vpop.xlane.xlu1 %214 }
  0xe8   : > { %424 = vpow2.f32 %v203_v10 }
  0xeb   : > { %v219_v22 = vpop.xlane.xlu1 %218 }
  0xf2   : > { %v425_v11 = vpop.eup %424 }
  0xf3   : > { %v205_v12 = vsel %vm198_vm0, %v425_v11, 0.0 }
  0xf4   : > { %206 = vadd.xlane.f32.xlu0 %v205_v12 }
 0x181   : > { %v207_v13 = vpop.xlane.xlu0 %206 }
 0x182   : > { %426 = vlog2.f32 %v207_v13 }
 0x18c   : > { %v427_v18 = vpop.eup %426 }
 0x18d   : > { %v209_v19 = vmul.f32 0.6931472, %v427_v18 }
 0x18f   : > { %v210_v21 = vadd.f32 %v209_v19, %v201_v8 }
 0x191   : > { %v220_v23 = vmul.f32 %v215_v15, %v210_v21 }
 0x193   : > { %v221_v24 = vsub.f32 %v220_v23, %v219_v22 }
 0x195   : > { %v228_v25 = vsel %vm227_vm1, %v221_v24, 0.0 }
 0x196   : > { %v230_v26 = vsel %vm229_vm2, %v228_v25, 0.0 }
 0x197   : > { %231 = vadd.xlane.f32.xlu0 %v230_v26 }
 0x224   : > { %v232_v27 = vpop.xlane.xlu0 %231 }
 0x225   : > { %v233_v28 = vrot.slane %v232_v27, 4 }
 0x227   : > { %v234_v29 = vadd.f32 %v233_v28, %v232_v27 }
 0x229   : > { %v235_v30 = vrot.slane %v234_v29, 2 }
 0x22b   : > { %v236_v31 = vadd.f32 %v235_v30, %v234_v29 }
 0x22d   : > { %v237_v32 = vrot.slane %v236_v31, 1 }
 0x22f   : > { %v238_v33 = vadd.f32 %v237_v32, %v236_v31 }
 0x231   : > { %371 = vpush %v238_v33 }
 0x262   : > { %s372_s4 = spop %371 }
 0x263   : > { %v245_v35 = vstv %s372_s4 }
 0x264   : > { %v246_v36 = vsel %vm244_vm5, %v245_v35, 0.0 }
 0x265   : > { %247 = vst [vmem:[%s195_s14] sm:$0xff] %v246_v36 }
 0x266   : > { %501 = shalt.err (!%p498_p1)
}
 0x267   : > { %s502_s27 = scalar_lea.hbm %s753_s17, 128  ;;  %s506_s8 = scalar_lea.hbm %s799_s2, 256 }
 0x268   : > { %p503_p11 = scmp.ne.s32.totalorder %s753_s17, %s502_s27  ;;  %p507_p4 = scmp.lt.u32.totalorder %s753_s17, %s799_s2 }
 0x269   : > { %p508_p10 = scmp.lt.u32.totalorder %s506_s8, %s502_s27  ;;  %p510_p13 = scmp.lt.u32.totalorder %s502_s27, %s753_s17 }
 0x26a   : > { %p504_p12 = pnand %p503_p11, %p812_p3 }
 0x26b   : > { %p509_p6 = por %p508_p10, %p507_p4 }
 0x26c   : > { %p505_p2 = pneg %p504_p12 }
 0x26d   : > { %p511_p7 = por %p510_p13, %p509_p6 }
 0x26f   : > { %p512_p5 = pnand %p511_p7, %p505_p2 }
 0x271   : > { %515 = shalt.err (!%p512_p5)
}
 0x272   : > { %377 = dma.vmem_to_hbm [thread:$0]  (%p812_p3), %s755_s28, 128, %s753_s17, %s249_s19  }
 0x273 PF: > { %s274_s29 = sand.u32 1, %s546_s9   ;;  %p813_p8 = scmp.ne.s32.totalorder %s805_s22, 0 }
 0x274   : > { %p814_p9 = scmp.ge.s32.totalorder %s558_s12, 2  ;;  %s275_s20 = scalar_lea.sflag [#allocation4], %s274_s29 }
 0x276   : > { %p387_p0 = pnand %p814_p9, %p813_p8 }
 0x278   : > { %541 = dma.done.wait (!%p387_p0), %s275_s20, 128  }
 0x279   : > { %543 = vsyncadd (!%p387_p0), %s275_s20, 4294967168  ;;  %p18_p1 = scmp.ge.s32.totalorder %s603_s15, 4   ;;  %s815_s9 = smov %s550_s10 }
 0x27a   : > { %s816_s10 = smov %s554_s11  ;;  %s817_s11 = smov %s615_s18 }
 0x27b   : > { %s818_s12 = smov %s603_s15  ;;  %20 = sbr.rel (!%p18_p1) target bundleno = 7 (0x7), region = 86 }
 0x282   :  { %280 = vsyncpa [#allocation3], 1 }
 0x283   :  { %282 = vsyncpa [#allocation3 + $0x1], 1 }
 0x284   :  { %283 = vsyncpa [#allocation6], 1 }
 0x285   :  { %285 = vsyncpa [#allocation6 + $0x1], 1 }
 0x286   :  { %286 = vsyncpa [#allocation4], 1 }
 0x287   :  { %288 = vsyncpa [#allocation4 + $0x1], 1 }

</bundles_post_ra>
